<compile_context>
chip_gen: v5e
topology: v5e:2x2
jax: 0.10.0
libtpu: 0.0.40
codegen_flags: <defaults>
</compile_context>

<pallas_src>
import jax
import jax.numpy as jnp
from jax.experimental import pallas as pl
from jax.experimental.pallas import tpu as pltpu

HIDDEN = 40    # nn.LSTM(hidden_size=40)
INPUT = 2      # nn.LSTM(input_size=2)
OUTPUT = 2     # nn.Linear(40, 2)
LANE = 128     # TPU lane width; each gate occupies one lane block


def _fused_kernel(x_ref, wg_ref, bg_ref, wh_ref, bh_ref, o_ref):
    """Fused (T==1) LSTM step + Conv1d(k=1) + Linear head.

    x_ref:  (B, I)        input at the single timestep
    wg_ref: (I, 3*128)    packed per-gate input weights, gate order [i, o, g],
                          each gate zero-padded into its own 128-lane block
    bg_ref: (1, 3*128)    packed combined biases (b_ih + b_hh), same layout
    wh_ref: (128, O)      fused head weight (Wc^T @ Wl^T), rows H..127 are zero
    bh_ref: (1, O)        fused head bias   (bc @ Wl^T + bl)
    o_ref:  (B, O)        output
    """
    x = x_ref[...]                                                    # (B, I)

    # Single input-projection matmul covering all three live gates.
    pre = (jnp.dot(x, wg_ref[...], preferred_element_type=jnp.float32)
           + bg_ref[...])                                             # (B, 384)

    # One sigmoid over the contiguous [i | o] blocks, one tanh over [g].
    sig = jax.nn.sigmoid(pre[:, 0:2 * LANE])                          # (B, 256)
    g_g = jnp.tanh(pre[:, 2 * LANE:3 * LANE])                         # (B, 128)
    i_g = sig[:, 0:LANE]                                              # (B, 128)
    o_g = sig[:, LANE:2 * LANE]                                       # (B, 128)

    # h0 = c0 = 0  =>  c = i*g (f-gate term is zero),  h = o * tanh(c).
    # Padding lanes: sigmoid(0)*tanh(0) == 0, so h is exactly zero there.
    c = i_g * g_g
    h = o_g * jnp.tanh(c)                                             # (B, 128)

    # Fused Conv1d(k=1) + Linear head: one matmul on the padded h block.
    o_ref[...] = (jnp.dot(h, wh_ref[...], preferred_element_type=jnp.float32)
                  + bh_ref[...]).astype(o_ref.dtype)


def init_params(key):
    """Raw parameters in PyTorch layout."""
    H, I, O = HIDDEN, INPUT, OUTPUT
    ks = jax.random.split(key, 8)
    s = 1.0 / jnp.sqrt(jnp.float32(H))
    u = lambda k, shape: jax.random.uniform(k, shape, jnp.float32, -s, s)
    return {
        "w_ih": u(ks[0], (4 * H, I)),     # nn.LSTM weight_ih_l0 (gates i,f,g,o)
        "w_hh": u(ks[1], (4 * H, H)),     # nn.LSTM weight_hh_l0
        "b_ih": u(ks[2], (4 * H,)),
        "b_hh": u(ks[3], (4 * H,)),
        "w_conv": u(ks[4], (H, H, 1)),    # nn.Conv1d(40, 40, 1) weight
        "b_conv": u(ks[5], (H,)),
        "w_lin": u(ks[6], (O, H)),        # nn.Linear(40, 2) weight
        "b_lin": u(ks[7], (O,)),
    }


def prepare_params(params):
    """One-time fold of weights into the kernel layout (outside the hot path)."""
    H, O = HIDDEN, OUTPUT
    I = params["w_ih"].shape[1]
    w_ih = params["w_ih"]                              # (4H, I), gate order i,f,g,o
    b = params["b_ih"] + params["b_hh"]                # (4H,)
    gate_idx = {"i": 0, "f": 1, "g": 2, "o": 3}

    def gate_w(name):                                  # (I, H), transposed for x @ W
        k = gate_idx[name]
        return w_ih[k * H:(k + 1) * H, :].T

    def gate_b(name):                                  # (H,)
        k = gate_idx[name]
        return b[k * H:(k + 1) * H]

    # Pack live gates [i, o, g] each into its own zero-padded 128-lane block.
    # (f-gate is dropped: with h0 = c0 = 0 and T == 1, f * c_prev == 0.)
    def pad_w(a):                                      # (I, H) -> (I, 128)
        return jnp.pad(a, ((0, 0), (0, LANE - H)))

    def pad_b(a):                                      # (H,) -> (128,)
        return jnp.pad(a, (0, LANE - H))

    w_gates = jnp.concatenate(
        [pad_w(gate_w("i")), pad_w(gate_w("o")), pad_w(gate_w("g"))], axis=1)   # (I, 384)
    b_gates = jnp.concatenate(
        [pad_b(gate_b("i")), pad_b(gate_b("o")), pad_b(gate_b("g"))]).reshape(1, 3 * LANE)

    # Fused Conv1d(k=1) + Linear head:  out = h @ (Wc^T @ Wl^T) + (bc @ Wl^T + bl)
    wc = params["w_conv"][:, :, 0].T                   # (C_in, C_out) = (H, H)
    wl = params["w_lin"].T                             # (H, O)
    w_head = wc @ wl                                   # (H, O)
    b_head = params["b_conv"].reshape(1, H) @ wl + params["b_lin"].reshape(1, O)
    w_head = jnp.pad(w_head, ((0, LANE - H), (0, 0)))  # (128, O); padding rows zero

    return {"w_gates": w_gates, "b_gates": b_gates,
            "w_head": w_head, "b_head": b_head}


def model_forward(folded, x):
    """x: (B, T, I) float32, batch_first like the PyTorch module (requires T == 1)."""
    B, T, I = x.shape
    O = OUTPUT
    if T != 1:
        # TODO(synk): PyTorch forward's squeeze(2) only removes dim 2 when T == 1;
        # only that path is implemented here.
        raise NotImplementedError("forward requires seq_len == 1 (squeeze(2))")

    x2d = jnp.reshape(x, (B, I))  # metadata-only reshape (T == 1)

    vmem = pl.BlockSpec(memory_space=pltpu.MemorySpace.VMEM)
    out = pl.pallas_call(
        _fused_kernel,
        out_shape=jax.ShapeDtypeStruct((B, O), jnp.float32),
        in_specs=[vmem] * 5,
        out_specs=vmem,
    )(x2d, folded["w_gates"], folded["b_gates"], folded["w_head"], folded["b_head"])
    return out


def _reference_forward(params, x):
    """Plain-JAX reference mirroring the PyTorch module (full LSTM, unfused head)."""
    B, T, I = x.shape
    H = HIDDEN
    w_ih, w_hh = params["w_ih"], params["w_hh"]
    b = params["b_ih"] + params["b_hh"]

    def step(carry, x_t):
        h, c = carry
        g = x_t @ w_ih.T + h @ w_hh.T + b
        i_g = jax.nn.sigmoid(g[:, 0 * H:1 * H])
        f_g = jax.nn.sigmoid(g[:, 1 * H:2 * H])
        g_g = jnp.tanh(g[:, 2 * H:3 * H])
        o_g = jax.nn.sigmoid(g[:, 3 * H:4 * H])
        c = f_g * c + i_g * g_g
        h = o_g * jnp.tanh(c)
        return (h, c), h

    h0 = jnp.zeros((B, H), jnp.float32)
    (_, _), hs = jax.lax.scan(step, (h0, h0), jnp.transpose(x, (1, 0, 2)))
    h_all = jnp.transpose(hs, (1, 0, 2))                          # (B, T, H)
    h_sq = jnp.transpose(h_all, (0, 2, 1))[:, :, 0]               # (B, H): permute + squeeze(2)
    y = h_sq @ params["w_conv"][:, :, 0].T + params["b_conv"]
    return y @ params["w_lin"].T + params["b_lin"]


if __name__ == "__main__":
    key = jax.random.PRNGKey(0)
    pkey, xkey = jax.random.split(key)
    params = init_params(pkey)
    folded = prepare_params(params)            # one-time, outside the jitted hot path

    B, T, I = 4, 1, INPUT                      # seq_len=1 as implied by x.squeeze(2)
    x = jax.random.normal(xkey, (B, T, I), jnp.float32)

    out = jax.jit(model_forward)(folded, x)
    out = jax.block_until_ready(out)

    ref = _reference_forward(params, x)
    assert out.shape == (B, OUTPUT), out.shape
    assert jnp.allclose(out, ref, atol=1e-4, rtol=1e-4), (out, ref)

    print("KERNEL_OK")
</pallas_src>

<mosaic_0001>
module attributes {stable_mosaic.version = 11 : i64} {
  func.func @_fused_kernel(%arg0: memref<4x2xf32, #tpu.memory_space<vmem>>, %arg1: memref<2x384xf32, #tpu.memory_space<vmem>>, %arg2: memref<1x384xf32, #tpu.memory_space<vmem>>, %arg3: memref<128x2xf32, #tpu.memory_space<vmem>>, %arg4: memref<1x2xf32, #tpu.memory_space<vmem>>, %arg5: memref<4x2xf32, #tpu.memory_space<vmem>>) attributes {dimension_semantics = [], scalar_prefetch = 0 : i64, scratch_operands = 0 : i64, tpu.core_type = #tpu.core_type<tc>} {
    %c0 = arith.constant 0 : index
    %c0_0 = arith.constant 0 : index
    %0 = vector.load %arg0[%c0, %c0_0] : memref<4x2xf32, #tpu.memory_space<vmem>>, vector<4x2xf32>
    %c0_1 = arith.constant 0 : index
    %c0_2 = arith.constant 0 : index
    %1 = vector.load %arg1[%c0_1, %c0_2] : memref<2x384xf32, #tpu.memory_space<vmem>>, vector<2x384xf32>
    %cst = arith.constant dense<0.000000e+00> : vector<4x384xf32>
    %2 = tpu.matmul %0, %1, %cst {dimension_numbers = #tpu.dot_dimension_numbers<[1], [0], [0], [1], [0, 0, 1, 1], [], []>} : vector<4x2xf32>, vector<2x384xf32>, vector<4x384xf32> -> vector<4x384xf32>
    %c0_3 = arith.constant 0 : index
    %c0_4 = arith.constant 0 : index
    %3 = vector.load %arg2[%c0_3, %c0_4] : memref<1x384xf32, #tpu.memory_space<vmem>>, vector<1x384xf32>
    %4 = vector.broadcast %3 : vector<1x384xf32> to vector<4x384xf32>
    %5 = arith.addf %2, %4 : vector<4x384xf32>
    %6 = vector.extract_strided_slice %5 {offsets = [0, 0], sizes = [4, 256], strides = [1, 1]} : vector<4x384xf32> to vector<4x256xf32>
    %7 = arith.negf %6 : vector<4x256xf32>
    %8 = math.exp %7 : vector<4x256xf32>
    %cst_5 = arith.constant 1.000000e+00 : f32
    %9 = vector.broadcast %cst_5 : f32 to vector<4x256xf32>
    %10 = arith.addf %9, %8 : vector<4x256xf32>
    %11 = arith.divf %9, %10 : vector<4x256xf32>
    %12 = vector.extract_strided_slice %5 {offsets = [0, 256], sizes = [4, 128], strides = [1, 1]} : vector<4x384xf32> to vector<4x128xf32>
    %13 = math.tanh %12 : vector<4x128xf32>
    %14 = vector.extract_strided_slice %11 {offsets = [0, 0], sizes = [4, 128], strides = [1, 1]} : vector<4x256xf32> to vector<4x128xf32>
    %15 = vector.extract_strided_slice %11 {offsets = [0, 128], sizes = [4, 128], strides = [1, 1]} : vector<4x256xf32> to vector<4x128xf32>
    %16 = arith.mulf %14, %13 : vector<4x128xf32>
    %17 = math.tanh %16 : vector<4x128xf32>
    %18 = arith.mulf %15, %17 : vector<4x128xf32>
    %c0_6 = arith.constant 0 : index
    %c0_7 = arith.constant 0 : index
    %19 = vector.load %arg3[%c0_6, %c0_7] : memref<128x2xf32, #tpu.memory_space<vmem>>, vector<128x2xf32>
    %cst_8 = arith.constant dense<0.000000e+00> : vector<4x2xf32>
    %20 = tpu.matmul %18, %19, %cst_8 {dimension_numbers = #tpu.dot_dimension_numbers<[1], [0], [0], [1], [0, 0, 1, 1], [], []>} : vector<4x128xf32>, vector<128x2xf32>, vector<4x2xf32> -> vector<4x2xf32>
    %c0_9 = arith.constant 0 : index
    %c0_10 = arith.constant 0 : index
    %21 = vector.load %arg4[%c0_9, %c0_10] : memref<1x2xf32, #tpu.memory_space<vmem>>, vector<1x2xf32>
    %22 = vector.broadcast %21 : vector<1x2xf32> to vector<4x2xf32>
    %23 = arith.addf %20, %22 : vector<4x2xf32>
    %c0_11 = arith.constant 0 : index
    %c0_12 = arith.constant 0 : index
    %24 = vector.load %arg5[%c0_11, %c0_12] : memref<4x2xf32, #tpu.memory_space<vmem>>, vector<4x2xf32>
    tpu.vector_store %arg5[%c0_11, %c0_12], %23 {strides = array<i32>} : memref<4x2xf32, #tpu.memory_space<vmem>>, vector<4x2xf32>,
    return
  }
}

</mosaic_0001>

<bundles_post_ra>
// kernel: model_forward.1
= control target key start
LH: loop header
LB: loop body
LE: loop exit
PB: predicated region body
PF: predicated region fallthrough
CT: control target
= control target key end

     0   :  { %vm39_vm0 = vcmask 1041408   ;;  %vm35_vm1 = vcmask 15360   ;;  %vm188_vm10 = vcmask 11264   ;;  %s308_s1 = inlined_call_operand.vmem [shape: f32[2,384], index: 1, kind: input, shape index: {}]   ;;  %s309_s0 = inlined_call_operand.vmem [shape: f32[4,2], index: 0, kind: input, shape index: {}]   ;;  %s310_s4 = inlined_call_operand.vmem [shape: f32[1,2], index: 4, kind: input, shape index: {}]   ;;  %s311_s3 = inlined_call_operand.vmem [shape: f32[128,2], index: 3, kind: input, shape index: {}]   ;;  %s312_s2 = inlined_call_operand.vmem [shape: f32[1,384], index: 2, kind: input, shape index: {}]   ;;  %s313_s5 = inlined_call_operand.vmem [shape: f32[4,2], index: 5, kind: output, shape index: {}]  }
   0x1   :  { %v21_v0 = vld [vmem:[%s308_s1] sm:$0x3f]  ;;  %v163_v5 = vld [vmem:[%s311_s3 + $0x78] sm:$0xff]  ;;  %v162_v6 = vld [vmem:[%s311_s3 + $0x70] sm:$0xff] }
   0x2   :  { %31 = vst [vmem:[#allocation1] ss:$4 sm:$0xff] %v21_v0  ;;  %v20_v1 = vld [vmem:[%s309_s0] sm:$0xf]  ;;  %168 = vmatpush.msra.mxu3 %v163_v5  ;;  %v161_v7 = vld [vmem:[%s311_s3 + $0x68] sm:$0xff]  ;;  %v159_v9 = vld [vmem:[%s311_s3 + $0x58] sm:$0xff] }
   0x3   :  { %v160_v8 = vld [vmem:[%s311_s3 + $0x60] sm:$0xff]  ;;  %v158_v10 = vld [vmem:[%s311_s3 + $0x50] sm:$0xff]  ;;  %v157_v11 = vld [vmem:[%s311_s3 + $0x48] sm:$0xff] }
   0x4   :  { %169 = vmatpush.msra.mxu3 %v162_v6  ;;  %v156_v12 = vld [vmem:[%s311_s3 + $0x40] sm:$0xff]  ;;  %v155_v14 = vld [vmem:[%s311_s3 + $0x38] sm:$0xff]  ;;  %v154_v17 = vld [vmem:[%s311_s3 + $0x30] sm:$0xff] }
   0x5   :  { %v22_v13 = vld [vmem:[%s312_s2] sm:$0x7]  ;;  %v153_v18 = vld [vmem:[%s311_s3 + $0x28] sm:$0xff]  ;;  %v151_v24 = vld [vmem:[%s311_s3 + $0x18] sm:$0xff] }
   0x6   :  { %170 = vmatpush.msra.mxu3 %v161_v7  ;;  %v24_v15 = vperm.slane %v22_v13, 0  ;;  %v25_v16 = vperm.slane %v22_v13, 1  ;;  %v152_v19 = vld [vmem:[%s311_s3 + $0x20] sm:$0xff]  ;;  %v150_v27 = vld [vmem:[%s311_s3 + $0x10] sm:$0xff]  ;;  %v149_v28 = vld [vmem:[%s311_s3 + $0x8] sm:$0xff]  ;;  %v26_v34 = vperm.slane %v22_v13, 2 }
   0x7   :  { %v148_v29 = vld [vmem:[%s311_s3] sm:$0xff] }
   0x8   :  { %171 = vmatpush.msra.mxu3 %v160_v8  ;;  %v202_v61 = vld [vmem:[%s310_s4] ss:$0 sm:$0xff] }
   0x9   :  { %v32_v2 = vld.sshfl [vmem:[#allocation1] sm:$0xff pattern:$0x73625140]  ;;  %v33_v3 = vld.sshfl [vmem:[#allocation1 + $0x8] sm:$0xff pattern:$0x73625140] }
   0xa   :  { %194 = vmatpush.msk.msra.mxu0 %vm39_vm0, %v32_v2  ;;  %196 = vmatpush.msk.msra.mxu1 %vm39_vm0, %v33_v3  ;;  %v34_v4 = vld.sshfl [vmem:[#allocation1 + $0x10] sm:$0xff pattern:$0x73625140] }
   0xb   :  { %195 = vmatmul.msk.f32.vlgmr.msra.gmra.mxu0 %vm35_vm1, %v20_v1  ;;  %197 = vmatmul.msk.f32.vlgmr.msra.gmra.mxu1 %vm35_vm1, %v20_v1 }
   0xc   :  { %198 = vmatpush.msk.msra.mxu2 %vm39_vm0, %v34_v4  ;;  %172 = vmatpush.msra.mxu3 %v159_v9 }
   0xd   :  { %199 = vmatmul.msk.f32.vlgmr.msra.gmra.mxu2 %vm35_vm1, %v20_v1 }
   0xe   :  { %173 = vmatpush.msra.mxu3 %v158_v10 }
  0x10   :  { %174 = vmatpush.msra.mxu3 %v157_v11 }
  0x12   :  { %175 = vmatpush.msra.mxu3 %v156_v12 }
  0x14   :  { %176 = vmatpush.msra.mxu3 %v155_v14 }
  0x16   :  { %177 = vmatpush.msra.mxu3 %v154_v17 }
  0x18   :  { %178 = vmatpush.msra.mxu3 %v153_v18 }
  0x1a   :  { %179 = vmatpush.msra.mxu3 %v152_v19 }
  0x1c   :  { %180 = vmatpush.msra.mxu3 %v151_v24 }
  0x1e   :  { %181 = vmatpush.msra.mxu3 %v150_v27 }
  0x20   :  { %182 = vmatpush.msra.mxu3 %v149_v28 }
  0x22   :  { %183 = vmatpush.msra.mxu3 %v148_v29 }
  0x88   :  { %v63_v20 = vpop.f32.mrf.mxu0  ;;  %v83_v21 = vpop.f32.mrf.mxu1 }
  0x89   :  { %v64_v22 = vadd.f32 %v63_v20, %v24_v15  ;;  %v84_v23 = vadd.f32 %v83_v21, %v25_v16 }
  0x8b   :  { %v200_v25 = vmul.f32 -1.442695, %v64_v22  ;;  %v201_v26 = vmul.f32 -1.442695, %v84_v23 }
  0x8d   :  { %203 = vpow2.f32 %v200_v25 }
  0x8e   :  { %205 = vpow2.f32 %v201_v26 }
  0x90   :  { %v103_v35 = vpop.f32.mrf.mxu2 }
  0x91   :  { %v104_v36 = vadd.f32 %v103_v35, %v26_v34 }
  0x93   :  { %v204_v30 = vpop.eup %203 }
  0x94   :  { %v206_v31 = vpop.eup %205  ;;  %v112_v32 = vadd.f32 1.0, %v204_v30 }
  0x95   :  { %v113_v33 = vadd.f32 1.0, %v206_v31 }
  0x96   :  { %207 = vrcp.f32 %v112_v32  ;;  %v125_v42 = vand.u32 2147483648, %v112_v32  ;;  %v123_v45 = vand.u32 2147483647, %v112_v32  ;;  %vm119_vm3 = vweird.f32 %v112_v32 }
  0x97   :  { %209 = vrcp.f32 %v113_v33  ;;  %vm134_vm6 = vweird.f32 %v113_v33  ;;  %v140_v54 = vand.u32 2147483648, %v113_v33  ;;  %v138_v55 = vand.u32 2147483647, %v113_v33 }
  0x98   :  { %211 = vtanh.f32 %v104_v36  ;;  %v126_v48 = vor.u32 1.1754944e-38, %v125_v42  ;;  %vm124_vm5 = vcmp.eq.f32.partialorder %v123_v45, 8.507059e+37 }
  0x99   :  { %v141_v57 = vor.u32 1.1754944e-38, %v140_v54  ;;  %vm139_vm9 = vcmp.eq.f32.partialorder %v138_v55, 8.507059e+37 }
  0x9c   :  { %v208_v37 = vpop.eup %207 }
  0x9d   :  { %v210_v38 = vpop.eup %209  ;;  %v115_v39 = vmul.f32 %v208_v37, %v112_v32  ;;  %vm120_vm2 = vweird.f32 %v208_v37 }
  0x9e   :  { %v130_v40 = vmul.f32 %v210_v38, %v113_v33  ;;  %v212_v47 = vpop.eup %211  ;;  %vm121_vm4 = vmor %vm119_vm3, %vm120_vm2  ;;  %vm135_vm7 = vweird.f32 %v210_v38 }
  0x9f   :  { %v116_v41 = vsub.f32 1.0, %v115_v39  ;;  %vm136_vm8 = vmor %vm134_vm6, %vm135_vm7 }
  0xa0   :  { %v131_v43 = vsub.f32 1.0, %v130_v40 }
  0xa1   :  { %v117_v44 = vmul.f32 %v208_v37, %v116_v41 }
  0xa2   :  { %v132_v49 = vmul.f32 %v210_v38, %v131_v43 }
  0xa3   :  { %v118_v46 = vadd.f32 %v208_v37, %v117_v44 }
  0xa4   :  { %v133_v53 = vadd.f32 %v210_v38, %v132_v49 }
  0xa5   :  { %v122_v50 = vsel %vm121_vm4, %v208_v37, %v118_v46 }
  0xa6   :  { %v127_v51 = vsel %vm124_vm5, %v126_v48, %v122_v50  ;;  %v137_v56 = vsel %vm136_vm8, %v210_v38, %v133_v53 }
  0xa7   :  { %v145_v52 = vmul.f32 %v212_v47, %v127_v51  ;;  %v142_v59 = vsel %vm139_vm9, %v141_v57, %v137_v56 }
  0xa9   :  { %213 = vtanh.f32 %v145_v52 }
  0xaf   :  { %v214_v58 = vpop.eup %213 }
  0xb0   :  { %v147_v60 = vmul.f32 %v214_v58, %v142_v59 }
  0xb2   :  { %184 = vmatmul.f32.vlgmr.msra.gmra.mxu3 %v147_v60 }
 0x135   :  { %v185_v62 = vpop.f32.mrf.mxu3 }
 0x136   :  { %v186_v63 = vadd.f32 %v202_v61, %v185_v62 }
 0x138   :  { %189 = vst.msk [vmem:[%s313_s5] sm:$0xf] %vm188_vm10, %v186_v63 }

</bundles_post_ra>
